<compile_context>
chip_gen: v7x
topology: tpu7x:2x2x1
jax: 0.10.0
libtpu: 0.0.40
codegen_flags: <defaults>
</compile_context>

<pallas_src>
import jax
import jax.numpy as jnp
from jax.experimental import pallas as pl
from jax.experimental.pallas import tpu as pltpu


# ---------------------------------------------------------------------------
# VMEM (BlockSpec-pipelined) identity copy
# ---------------------------------------------------------------------------

def _copy_kernel(x_ref, o_ref):
    # Identity copy of the current tile (HBM<->VMEM DMA handled by BlockSpec).
    o_ref[...] = x_ref[...]


# dtype itemsize (bytes) -> packed sublane row multiple for full vregs.
_SUBLANE_MULTIPLE = {1: 32, 2: 16, 4: 8}


def _default_block_bytes():
    """Per-generation working-block size for the VMEM copy path."""
    try:
        kind = jax.devices()[0].device_kind.lower()
    except Exception:
        return 2 * 1024 * 1024
    if "v7" in kind:
        # 3.2 TB/s HBM makes the ~0.35us/step overhead ~20% of a 2 MiB step;
        # 8 MiB blocks cut that to <7%.  vmem_limit_bytes is raised below.
        return 8 * 1024 * 1024
    if "v6" in kind:
        # 4 buffers x 4 MiB = 16 MiB, inside the 32 MiB default scoped VMEM.
        return 4 * 1024 * 1024
    # v5e (16 MiB default scoped VMEM) and unknown chips: stay conservative.
    return 2 * 1024 * 1024


def _choose_lane_width(total_elems, max_width=4096):
    """Largest multiple of 128 (<= max_width) that divides total_elems."""
    w = (min(max_width, total_elems) // 128) * 128
    while w >= 128:
        if total_elems % w == 0:
            return w
        w -= 128
    return None


def _pallas_copy_2d(x2d, *, target_block_bytes=None):
    """Identity copy of a (R, W) slab through a tiled Pallas kernel.

    W must be a multiple of 128 (lane-dense, unmasked full-width stores).
    R need NOT be divisible by the block row count: a pl.cdiv grid is used and
    the final partial block's stores are masked by Pallas.
    """
    R, W = x2d.shape
    itemsize = jnp.dtype(x2d.dtype).itemsize
    sub = _SUBLANE_MULTIPLE.get(itemsize, 8)

    if target_block_bytes is None:
        target_block_bytes = _default_block_bytes()

    # Round block rows down to the dtype's packed sublane multiple.
    rows = (target_block_bytes // (W * itemsize)) // sub * sub
    rows = max(rows, sub)

    slab_bytes = R * W * itemsize
    # Guarantee >=2 grid steps for slabs above ~2 MiB so the two v7x
    # TensorCores both participate under dimension_semantics=("parallel",)
    # (measured no-op on single-TC v5e/v6e).
    if slab_bytes > 2 * 1024 * 1024 and R > sub:
        half_rows = max(((R + 1) // 2 // sub) * sub, sub)
        rows = min(rows, half_rows)

    if rows >= R:
        rows = R  # tiny slab: single full-extent block (no divisibility rule)

    grid = (pl.cdiv(R, rows),)
    block_bytes = rows * W * itemsize
    # 2 input + 2 output buffers (double buffering) + generous margin; always
    # well within physical VMEM (64 MiB v7x / 128 MiB v5e/v6e).
    vmem_limit = max(4 * block_bytes + (4 << 20), 16 << 20)

    return pl.pallas_call(
        _copy_kernel,
        out_shape=jax.ShapeDtypeStruct((R, W), x2d.dtype),
        grid=grid,
        in_specs=[pl.BlockSpec((rows, W), lambda i: (i, 0))],
        out_specs=pl.BlockSpec((rows, W), lambda i: (i, 0)),
        # Pure-bandwidth op: tell XLA's scheduler so it can overlap neighbors.
        cost_estimate=pl.CostEstimate(
            flops=0, transcendentals=0, bytes_accessed=2 * slab_bytes),
        compiler_params=pltpu.CompilerParams(
            dimension_semantics=("parallel",),
            vmem_limit_bytes=vmem_limit,
        ),
    )(x2d)


# ---------------------------------------------------------------------------
# Direct HBM->HBM DMA identity copy (no VMEM round trip)
# ---------------------------------------------------------------------------

def _make_hbm_dma_kernel(row_splits):
    """Kernel issuing one HBM->HBM DMA per (static) leading-axis chunk."""

    def kernel(x_hbm, o_hbm, sem):
        copies = []
        for i, (start, size) in enumerate(row_splits):
            cp = pltpu.make_async_copy(
                x_hbm.at[pl.ds(start, size)],
                o_hbm.at[pl.ds(start, size)],
                sem.at[i],
            )
            cp.start()          # all chunks in flight concurrently
            copies.append(cp)
        for cp in copies:
            cp.wait()

    return kernel


def _pallas_copy_dma(x, *, max_chunks=4):
    """HBM->HBM DMA copy of `x` (any shape / dtype / total size)."""
    squeeze = False
    if x.ndim == 0:
        x = jnp.reshape(x, (1,))
        squeeze = True

    R = x.shape[0]
    n = max(1, min(max_chunks, R))
    base, rem = divmod(R, n)
    splits, start = [], 0
    for i in range(n):
        size = base + (1 if i < rem else 0)
        if size == 0:
            continue
        splits.append((start, size))
        start += size

    itemsize = jnp.dtype(x.dtype).itemsize
    out = pl.pallas_call(
        _make_hbm_dma_kernel(splits),
        out_shape=jax.ShapeDtypeStruct(x.shape, x.dtype),
        in_specs=[pl.BlockSpec(memory_space=pl.ANY)],
        out_specs=pl.BlockSpec(memory_space=pl.ANY),
        scratch_shapes=[pltpu.SemaphoreType.DMA((len(splits),))],
        cost_estimate=pl.CostEstimate(
            flops=0, transcendentals=0,
            bytes_accessed=2 * x.size * itemsize),
    )(x)

    if squeeze:
        out = jnp.reshape(out, ())
    return out


# ---------------------------------------------------------------------------
# torch.view equivalent
# ---------------------------------------------------------------------------

def _resolve_shape(shape, total):
    shape = list(shape)
    if -1 in shape:
        known = 1
        for s in shape:
            if s != -1:
                known *= s
        shape[shape.index(-1)] = total // known
    out_total = 1
    for s in shape:
        out_total *= s
    assert out_total == total, "view shape incompatible with input size"
    return tuple(shape)


def view(x, shape, *, materialize=False, donate=False, method="auto",
         target_block_bytes=None, max_lane_width=4096):
    """JAX/Pallas equivalent of torch `x.view(*shape)` (supports one -1).

    Default: metadata-only `jnp.reshape` (zero HBM traffic — same cost as
    torch.view on a contiguous tensor).

    materialize=True: force the bytes through a Pallas copy so the result is
    a physically fresh buffer.  method="vmem" uses the tiled BlockSpec copy,
    method="dma" the direct HBM->HBM DMA; "auto" picks "vmem" for lane-dense
    (128-divisible) totals and "dma" otherwise, so odd sizes still materialize.

    donate=True: the caller allows reuse of x's buffer, so the copy is skipped
    entirely (the old behavior self-aliased the copy and paid 2N bytes of HBM
    traffic while still returning x's buffer — pure waste).
    """
    total = x.size
    out_shape = _resolve_shape(shape, total)

    if not materialize:
        return jnp.reshape(x, out_shape)

    if donate:
        # Donated input: reusing its buffer is the whole point -> zero traffic.
        return jnp.reshape(x, out_shape)

    w = _choose_lane_width(total, max_lane_width)
    use_dma = (method == "dma") or (w is None)

    if use_dma:
        y = _pallas_copy_dma(x)
        return jnp.reshape(y, out_shape)

    x2d = jnp.reshape(x, (total // w, w))
    y2d = _pallas_copy_2d(x2d, target_block_bytes=target_block_bytes)
    return jnp.reshape(y2d, out_shape)


if __name__ == "__main__":
    key = jax.random.PRNGKey(0)

    # NCHW input consistent with View((2, -1)) flattening conv features:
    # (batch=2, channels=4, H=16, W=16) -> (2, 1024).
    x = jax.random.normal(key, (2, 4, 16, 16), dtype=jnp.float32)
    ref = jnp.reshape(x, (2, 4 * 16 * 16))

    # 1) Default (recommended) path: metadata-only reshape, zero HBM traffic.
    y_meta = jax.block_until_ready(view(x, (2, -1)))
    assert y_meta.shape == ref.shape and y_meta.dtype == ref.dtype
    assert bool(jnp.all(y_meta == ref))

    # 2) Materialize via the tiled VMEM copy kernel (fresh buffer, no alias).
    y_vmem = jax.block_until_ready(view(x, (2, -1), materialize=True))
    assert y_vmem.shape == ref.shape and y_vmem.dtype == ref.dtype
    assert bool(jnp.all(y_vmem == ref))

    # 3) Multi-block grid + masked partial tail: force W=256, 8-row blocks so
    #    the slab is (25, 256) -> grid of 4 with a 1-row final block.
    x2 = jax.random.normal(jax.random.PRNGKey(0), (2, 2, 40, 40),
                           dtype=jnp.float32)  # 6400 elems
    y2 = jax.block_until_ready(
        view(x2, (4, -1), materialize=True,
             target_block_bytes=8 * 256 * 4, max_lane_width=256))
    ref2 = jnp.reshape(x2, (4, 1600))
    assert y2.shape == ref2.shape and bool(jnp.all(y2 == ref2))

    # 4) bf16 path: dtype-aware sublane handling (16-row packing).
    x3 = jax.random.normal(key, (2, 16, 32, 32),
                           dtype=jnp.float32).astype(jnp.bfloat16)
    y3 = jax.block_until_ready(view(x3, (2, -1), materialize=True))
    ref3 = jnp.reshape(x3, (2, 16 * 32 * 32))
    assert y3.shape == ref3.shape and y3.dtype == ref3.dtype
    assert bool(jnp.all(y3 == ref3))

    # 5) Odd total (105 elems, not divisible by 128): materialize now really
    #    materializes, via the chunked HBM->HBM DMA copy.
    x4 = jax.random.normal(key, (3, 5, 7), dtype=jnp.float32)
    y4 = jax.block_until_ready(view(x4, (5, -1), materialize=True))
    ref4 = jnp.reshape(x4, (5, 21))
    assert y4.shape == ref4.shape and bool(jnp.all(y4 == ref4))

    # 6) Explicit DMA method on a lane-dense total (2 chunks in flight).
    y_dma = jax.block_until_ready(view(x, (2, -1), materialize=True,
                                       method="dma"))
    assert y_dma.shape == ref.shape and bool(jnp.all(y_dma == ref))

    # 7) Donated materialize: skips the copy entirely (zero HBM traffic).
    y_don = jax.block_until_ready(view(x, (2, -1), materialize=True,
                                       donate=True))
    assert y_don.shape == ref.shape and bool(jnp.all(y_don == ref))

    print("KERNEL_OK")
</pallas_src>

<mosaic_0001>
module attributes {stable_mosaic.version = 11 : i64} {
  func.func @_copy_kernel(%arg0: i32, %arg1: memref<1x2048xf32, #tpu.memory_space<vmem>>, %arg2: memref<1x2048xf32, #tpu.memory_space<vmem>>) attributes {dimension_semantics = [#tpu.dimension_semantics<parallel>], iteration_bounds = array<i64: 1>, scalar_prefetch = 0 : i64, scratch_operands = 0 : i64, tpu.core_type = #tpu.core_type<tc>, window_params = [{transform_indices = @transform_0, window_bounds = array<i64: 1, 2048>}, {transform_indices = @transform_1, window_bounds = array<i64: 1, 2048>}]} {
    %c0 = arith.constant 0 : index
    %c0_0 = arith.constant 0 : index
    %0 = vector.load %arg1[%c0, %c0_0] : memref<1x2048xf32, #tpu.memory_space<vmem>>, vector<1x2048xf32>
    %c0_1 = arith.constant 0 : index
    %c0_2 = arith.constant 0 : index
    %1 = vector.load %arg2[%c0_1, %c0_2] : memref<1x2048xf32, #tpu.memory_space<vmem>>, vector<1x2048xf32>
    tpu.vector_store %arg2[%c0_1, %c0_2], %0 {strides = array<i32>} : memref<1x2048xf32, #tpu.memory_space<vmem>>, vector<1x2048xf32>,
    return
  }
  func.func @transform_0(%arg0: i32) -> (i32, i32) {
    %c0_i32 = arith.constant 0 : i32
    %c0_i32_0 = arith.constant 0 : i32
    return %arg0, %c0_i32 : i32, i32
  }
  func.func @transform_1(%arg0: i32) -> (i32, i32) {
    %c0_i32 = arith.constant 0 : i32
    %c0_i32_0 = arith.constant 0 : i32
    return %arg0, %c0_i32 : i32, i32
  }
}

</mosaic_0001>

<bundles_post_ra>
// kernel: tpu_custom_call.1
= control target key start
LH: loop header
LB: loop body
LE: loop exit
PB: predicated region body
PF: predicated region fallthrough
CT: control target
= control target key end

     0   :  { %6 = vsyncpa [#allocation3], 0  ;;  %s126_s0 = inlined_call_operand.hbm [shape: f32[1,2048], index: 0, kind: input, shape index: {}]   ;;  %s127_s1 = inlined_call_operand.hbm [shape: f32[1,2048], index: 1, kind: output, shape index: {}]  }
   0x1   :  { %7 = vsyncpa [#allocation4], 0  ;;  %s90_s6 = smov [#allocation2]   ;;  %s42_s10 = scalar_lea.hbm %s126_s0, 256 }
   0x2   :  { %s14_s7 = sshll.u32 %s90_s6, 4  ;;  %p43_p0 = scmp.ne.s32.totalorder %s126_s0, %s42_s10  ;;  %s15_s7 = int_to_ptr.vmem [resolvable:$true] %s14_s7 }
   0x3   :  { %p46_p1 = scmp.lt.u32.totalorder %s42_s10, %s126_s0 }
   0x5   :  { %p48_p2 = pnand %p46_p1, %p43_p0 }
   0x7   :  { %51 = shalt.err (!%p48_p2)
}
   0x8   :  { %s52_s15 = scalar_lea.vmem %s15_s7, 256  ;;  %p57_p4 = scmp.lt.s32.totalorder %s15_s7, %s15_s7 }
   0x9   :  { %p53_p3 = scmp.ne.s32.totalorder %s15_s7, %s52_s15  ;;  %p58_p5 = scmp.lt.s32.totalorder %s52_s15, %s52_s15 }
   0xb   :  { %p59_p6 = por %p58_p5, %p57_p4 }
   0xd   :  { %p60_p7 = pnand %p59_p6, %p53_p3 }
   0xf   :  { %63 = shalt.err (!%p60_p7)
}
  0x10   :  { %17 = dma.hbm_to_vmem [thread:$0]  %s126_s0, 256, %s15_s7, [#allocation3]  }
  0x11   :  { %86 = dma.done.wait [#allocation3], 256  }
  0x12   :  { %87 = vsyncadd [#allocation3], 4294967040  ;;  %s91_s18 = smov [#allocation5]   ;;  %v21_v0 = vld [vmem:[#allocation2] sm:$0xff]  ;;  %v22_v1 = vld [vmem:[#allocation2 + $0x8] sm:$0xff] }
  0x13   :  { %s31_s19 = sshll.u32 %s91_s18, 4  ;;  %23 = vst [vmem:[#allocation5] sm:$0xff] %v21_v0  ;;  %24 = vst [vmem:[#allocation5 + $0x8] sm:$0xff] %v22_v1  ;;  %s32_s19 = int_to_ptr.vmem [resolvable:$true] %s31_s19 }
  0x14   :  { %s64_s20 = scalar_lea.vmem %s32_s19, 256  ;;  %p69_p9 = scmp.lt.s32.totalorder %s32_s19, %s32_s19 }
  0x15   :  { %p65_p8 = scmp.ne.s32.totalorder %s32_s19, %s64_s20  ;;  %p70_p10 = scmp.lt.s32.totalorder %s64_s20, %s64_s20 }
  0x17   :  { %p71_p11 = por %p70_p10, %p69_p9 }
  0x19   :  { %p72_p12 = pnand %p71_p11, %p65_p8 }
  0x1b   :  { %75 = shalt.err (!%p72_p12)
}
  0x1c   :  { %s76_s0 = scalar_lea.hbm %s127_s1, 256 }
  0x1d   :  { %p77_p13 = scmp.ne.s32.totalorder %s127_s1, %s76_s0  ;;  %p80_p0 = scmp.lt.u32.totalorder %s76_s0, %s127_s1 }
  0x1f   :  { %p82_p1 = pnand %p80_p0, %p77_p13 }
  0x21   :  { %85 = shalt.err (!%p82_p1)
}
  0x22   :  { %34 = dma.vmem_to_hbm [thread:$0]  %s32_s19, 256, %s127_s1, [#allocation4]  }
  0x23   :  { %88 = dma.done.wait [#allocation4], 256  }
  0x24   :  { %89 = vsyncadd [#allocation4], 4294967040 }
  0x25   :  { %38 = vsyncpa [#allocation3], 1 }
  0x26   :  { %39 = vsyncpa [#allocation4], 1 }

</bundles_post_ra>
